<compile_context>
chip_gen: v6e
topology: v6e:2x2x1
jax: 0.10.0
libtpu: 0.0.40
codegen_flags: <defaults>
</compile_context>

<pallas_src>
import functools

import jax
import jax.numpy as jnp
from jax.experimental import pallas as pl
from jax.experimental.pallas import tpu as pltpu


def _round_up(n, m):
    return (n + m - 1) // m * m


def _pad_to(a, shape):
    pads = [(0, t - s) for s, t in zip(a.shape, shape)]
    return jnp.pad(a, pads)


# ---------------------------------------------------------------------------
# Kernel
# ---------------------------------------------------------------------------
def mlp_kernel(x_ref, w1_ref, bgb_ref, w2_ref, b2_ref, o_ref, acc_ref, *, eps, hidden_true):
    """Grid = (batch tiles, d_in K-tiles).  Accumulate x@W1 over K; finalize at last K step."""
    k = pl.program_id(1)

    @pl.when(k == 0)
    def _init():
        acc_ref[...] = jnp.zeros_like(acc_ref)

    # Partial hidden matmul on the MXU: bf16 x bf16 -> f32 accumulator.
    acc_ref[...] += jnp.dot(x_ref[...], w1_ref[...], preferred_element_type=jnp.float32)

    @pl.when(k == pl.num_programs(1) - 1)
    def _finalize():
        b1 = bgb_ref[0:1, :]      # (1, H) f32
        gamma = bgb_ref[1:2, :]   # padded lanes are 0 -> zero out padded hidden columns
        beta = bgb_ref[2:3, :]

        h = acc_ref[...] + b1
        h = jnp.maximum(h, 0.0)   # ReLU

        # LayerNorm over the TRUE hidden width.  Padded hidden columns of h are exactly 0
        # (zero-padded W1 columns + zero bias), so full-row sums equal true-row sums.
        inv_h = 1.0 / hidden_true
        mean = jnp.sum(h, axis=-1, keepdims=True) * inv_h
        ex2 = jnp.sum(h * h, axis=-1, keepdims=True) * inv_h       # one-pass variance
        var = jnp.maximum(ex2 - mean * mean, 0.0)                  # clamp f32 cancellation
        hn = (h - mean) * jax.lax.rsqrt(var + eps)
        hn = hn * gamma + beta

        # Dropout: eval-mode identity.
        # TODO(synk): training-mode dropout via pltpu.prng_seed / prng_random_bits.

        out = jnp.dot(hn.astype(jnp.bfloat16), w2_ref[...],
                      preferred_element_type=jnp.float32) + b2_ref[...]
        o_ref[...] = out.astype(o_ref.dtype)


# ---------------------------------------------------------------------------
# Generation-aware tile / VMEM-budget selection
# ---------------------------------------------------------------------------
def _largest_divisor_tile(total, cap):
    """Largest multiple of 128 that divides `total` (itself a multiple of 128) and is <= cap."""
    cap = max(128, min(cap, total))
    for cand in range(cap - cap % 128, 127, -128):
        if total % cand == 0:
            return cand
    return 128


def _select_tiles(B, d_in_p, H_p, d_out_p):
    try:
        vmem_cap = int(pltpu.get_tpu_info().vmem_capacity_bytes)
    except Exception:
        vmem_cap = 64 * 1024 * 1024       # conservative (v7x-sized) fallback
    big_vmem = vmem_cap >= 100 * 1024 * 1024   # v5e / v6e (128 MiB) vs v7x (64 MiB)
    target_b = 512 if big_vmem else 384
    target_k = 1024 if big_vmem else 512
    budget = int(vmem_cap * 0.85)              # ~109 MiB on v5e/v6e, ~54 MiB on v7x

    # K tile: multiple of 128 that divides d_in_p -> no zero-padded K work.
    block_k = _largest_divisor_tile(d_in_p, target_k)

    # Batch tile: minimize padding; keep >=2 parallel tiles when possible (megacore / 2 TCs).
    num_tiles = max(1, -(-B // target_b))
    if num_tiles == 1 and B >= 16:
        num_tiles = 2
    block_b = _round_up(-(-B // num_tiles), 8)

    def footprint(bb, bk):
        return (2 * bb * bk * 2            # x tiles (bf16, double-buffered)
                + 2 * bk * H_p * 2         # W1 K-slices (bf16, double-buffered)
                + H_p * d_out_p * 2        # W2 (bf16, single-buffered)
                + 8 * H_p * 4              # fused b1/gamma/beta (sublane-padded)
                + 8 * d_out_p * 4          # b2 (sublane-padded)
                + bb * H_p * 4             # f32 hidden accumulator scratch
                + 2 * bb * d_out_p * 4)    # f32 output tiles (double-buffered)

    # Shrink tiles until the working set fits the budget.
    while footprint(block_b, block_k) > budget:
        if block_b > 64:
            block_b = _round_up(block_b // 2, 8)
        elif block_k > 128:
            block_k = _largest_divisor_tile(d_in_p, block_k - 128)
        else:
            break  # resident-W2 layout too big; TODO(synk): stream W2 over d_out tiles

    vmem_limit = min(int(vmem_cap * 0.9),
                     max(budget, footprint(block_b, block_k) + (4 << 20)))
    return block_b, block_k, vmem_limit


# ---------------------------------------------------------------------------
# pallas_call builder + forward
# ---------------------------------------------------------------------------
def _build_call(block_b, block_k, B_p, d_in_p, H_p, d_out_p, eps, hidden_true,
                vmem_limit, single_buffer_consts):
    def const_spec(shape):
        # Constant index_map -> the block never changes; single-buffer it to halve VMEM.
        if single_buffer_consts:
            return pl.BlockSpec(shape, lambda i, k: (0, 0),
                                pipeline_mode=pl.Buffered(buffer_count=1))
        return pl.BlockSpec(shape, lambda i, k: (0, 0))

    kernel = functools.partial(mlp_kernel, eps=eps, hidden_true=hidden_true)
    return pl.pallas_call(
        kernel,
        out_shape=jax.ShapeDtypeStruct((B_p, d_out_p), jnp.float32),
        grid_spec=pltpu.PrefetchScalarGridSpec(
            num_scalar_prefetch=0,
            grid=(B_p // block_b, d_in_p // block_k),
            in_specs=[
                pl.BlockSpec((block_b, block_k), lambda i, k: (i, k)),   # x tile
                pl.BlockSpec((block_k, H_p), lambda i, k: (k, 0)),       # W1^T K-slice
                const_spec((3, H_p)),                                    # fused b1/gamma/beta
                const_spec((H_p, d_out_p)),                              # W2^T (resident, bf16)
                const_spec((1, d_out_p)),                                # b2
            ],
            out_specs=pl.BlockSpec((block_b, d_out_p), lambda i, k: (i, 0)),
            scratch_shapes=[pltpu.VMEM((block_b, H_p), jnp.float32)],    # hidden accumulator
        ),
        compiler_params=pltpu.CompilerParams(
            dimension_semantics=("parallel", "arbitrary"),
            vmem_limit_bytes=int(vmem_limit),
        ),
    )


def prepare_params(w1_t, b1, gamma, beta, w2_t, b2):
    """One-time weight prep: 128-pad feature dims, cast MXU feeds to bf16 (hoisted off the
    per-call path so forward never re-reads/re-writes the weights in HBM)."""
    d_in, H = w1_t.shape
    d_out = w2_t.shape[1]
    d_in_p, H_p, d_out_p = (_round_up(d, 128) for d in (d_in, H, d_out))

    w1_p = _pad_to(w1_t, (d_in_p, H_p)).astype(jnp.bfloat16)
    w2_p = _pad_to(w2_t, (H_p, d_out_p)).astype(jnp.bfloat16)
    bgb = jnp.concatenate(
        [_pad_to(b1, (1, H_p)), _pad_to(gamma, (1, H_p)), _pad_to(beta, (1, H_p))],
        axis=0).astype(jnp.float32)
    b2_p = _pad_to(b2, (1, d_out_p)).astype(jnp.float32)
    return {"w1": w1_p, "bgb": bgb, "w2": w2_p, "b2": b2_p,
            "d_in": d_in, "hidden": H, "d_out": d_out}


def mlp_forward(x, params, *, eps=1e-5):
    """x: (B, d_in) f32; params from prepare_params.  Returns (B, d_out) f32."""
    B, d_in = x.shape
    assert d_in == params["d_in"], "input feature dim mismatch"
    d_in_p, H_p = params["w1"].shape
    d_out_p = params["w2"].shape[1]
    H, d_out = params["hidden"], params["d_out"]

    block_b, block_k, vmem_limit = _select_tiles(B, d_in_p, H_p, d_out_p)
    B_p = _round_up(B, block_b)

    # Only activations are padded/cast per call.
    x_p = _pad_to(x, (B_p, d_in_p)).astype(jnp.bfloat16)
    args = (x_p, params["w1"], params["bgb"], params["w2"], params["b2"])

    common = (block_b, block_k, B_p, d_in_p, H_p, d_out_p, eps, float(H), vmem_limit)
    try:
        out_p = _build_call(*common, single_buffer_consts=True)(*args)
    except Exception:
        # Fallback for Pallas builds without per-BlockSpec pipeline_mode support:
        # identical math, default double-buffering (just uses more VMEM).
        out_p = _build_call(*common, single_buffer_consts=False)(*args)

    return out_p[:B, :d_out]


# ---------------------------------------------------------------------------
# Parameter init (matches the PyTorch module) + pure-JAX reference
# ---------------------------------------------------------------------------
def xavier_uniform(key, out_features, in_features):
    """Matches nn.init.xavier_uniform_ on a PyTorch Linear weight (out, in)."""
    bound = jnp.sqrt(6.0 / (in_features + out_features))
    return jax.random.uniform(
        key, (out_features, in_features), jnp.float32, minval=-bound, maxval=bound)


def make_params(key, input_dim, hidden_dim, output_dim):
    k1, k2 = jax.random.split(key)
    # nn.Linear(input_dim, hidden_dim): weight (hidden, input), xavier; bias 0
    w1 = xavier_uniform(k1, hidden_dim, input_dim)
    b1 = jnp.zeros((1, hidden_dim), jnp.float32)
    # nn.LayerNorm(hidden_dim): weight 1, bias 0
    gamma = jnp.ones((1, hidden_dim), jnp.float32)
    beta = jnp.zeros((1, hidden_dim), jnp.float32)
    # nn.Linear(hidden_dim, output_dim)
    w2 = xavier_uniform(k2, output_dim, hidden_dim)
    b2 = jnp.zeros((1, output_dim), jnp.float32)
    # pre-transpose for x @ W layout in the kernel
    return w1.T, b1, gamma, beta, w2.T, b2


def reference_forward(x, w1_t, b1, gamma, beta, w2_t, b2, eps=1e-5):
    """Pure-JAX reference with the same bf16 weight/activation rounding as the kernel."""
    xb = x.astype(jnp.bfloat16).astype(jnp.float32)
    w1 = w1_t.astype(jnp.bfloat16).astype(jnp.float32)
    w2 = w2_t.astype(jnp.bfloat16).astype(jnp.float32)
    h = xb @ w1 + b1
    h = jnp.maximum(h, 0.0)
    mean = jnp.mean(h, axis=-1, keepdims=True)
    var = jnp.mean((h - mean) ** 2, axis=-1, keepdims=True)
    hn = (h - mean) / jnp.sqrt(var + eps)
    hn = hn * gamma + beta
    return hn.astype(jnp.bfloat16).astype(jnp.float32) @ w2 + b2


if __name__ == "__main__":
    # MLP(input_dim=16, hidden_dim=32, output_dim=8, layers=2, dropout=0.1, activation=nn.ReLU())
    input_dim, hidden_dim, output_dim = 16, 32, 8
    batch = 16

    key = jax.random.PRNGKey(0)
    kx, kp = jax.random.split(key)
    x = jax.random.normal(kx, (batch, input_dim), jnp.float32)
    raw_params = make_params(kp, input_dim, hidden_dim, output_dim)
    params = prepare_params(*raw_params)

    out = mlp_forward(x, params)
    out = jax.block_until_ready(out)

    ref = reference_forward(x, *raw_params)
    assert out.shape == (batch, output_dim)
    assert jnp.allclose(out, ref, atol=1e-2, rtol=1e-2), "mismatch vs reference"

    print("KERNEL_OK")
</pallas_src>

<mosaic_0001>
module attributes {stable_mosaic.version = 11 : i64} {
  func.func @mlp_kernel(%arg0: i32, %arg1: i32, %arg2: memref<8x128xbf16, #tpu.memory_space<vmem>>, %arg3: memref<128x128xbf16, #tpu.memory_space<vmem>>, %arg4: memref<3x128xf32, #tpu.memory_space<vmem>>, %arg5: memref<128x128xbf16, #tpu.memory_space<vmem>>, %arg6: memref<1x128xf32, #tpu.memory_space<vmem>>, %arg7: memref<8x128xf32, #tpu.memory_space<vmem>>, %arg8: memref<8x128xf32, #tpu.memory_space<vmem>>) attributes {dimension_semantics = [#tpu.dimension_semantics<parallel>, #tpu.dimension_semantics<arbitrary>], iteration_bounds = array<i64: 2, 1>, scalar_prefetch = 0 : i64, scratch_operands = 1 : i64, tpu.core_type = #tpu.core_type<tc>, window_params = [{transform_indices = @transform_0, window_bounds = array<i64: 8, 128>}, {transform_indices = @transform_1, window_bounds = array<i64: 128, 128>}, {pipeline_mode = #tpu.pipeline_mode<synchronous>, transform_indices = @transform_2, window_bounds = array<i64: 3, 128>}, {pipeline_mode = #tpu.pipeline_mode<synchronous>, transform_indices = @transform_3, window_bounds = array<i64: 128, 128>}, {pipeline_mode = #tpu.pipeline_mode<synchronous>, transform_indices = @transform_4, window_bounds = array<i64: 1, 128>}, {transform_indices = @transform_5, window_bounds = array<i64: 8, 128>}]} {
    %c0_i32 = arith.constant 0 : i32
    %0 = arith.cmpi eq, %arg1, %c0_i32 : i32
    %1 = arith.extui %0 : i1 to i32
    %c0_i32_0 = arith.constant 0 : i32
    %2 = arith.cmpi ne, %1, %c0_i32_0 : i32
    scf.if %2 {
      %cst_10 = arith.constant 0.000000e+00 : f32
      %12 = vector.broadcast %cst_10 : f32 to vector<8x128xf32>
      %c0_11 = arith.constant 0 : index
      %c0_12 = arith.constant 0 : index
      %13 = vector.load %arg8[%c0_11, %c0_12] : memref<8x128xf32, #tpu.memory_space<vmem>>, vector<8x128xf32>
      tpu.vector_store %arg8[%c0_11, %c0_12], %12 {strides = array<i32>} : memref<8x128xf32, #tpu.memory_space<vmem>>, vector<8x128xf32>,
    } else {
    }
    %c0 = arith.constant 0 : index
    %c0_1 = arith.constant 0 : index
    %3 = vector.load %arg8[%c0, %c0_1] : memref<8x128xf32, #tpu.memory_space<vmem>>, vector<8x128xf32>
    %c0_2 = arith.constant 0 : index
    %c0_3 = arith.constant 0 : index
    %4 = vector.load %arg2[%c0_2, %c0_3] : memref<8x128xbf16, #tpu.memory_space<vmem>>, vector<8x128xbf16>
    %c0_4 = arith.constant 0 : index
    %c0_5 = arith.constant 0 : index
    %5 = vector.load %arg3[%c0_4, %c0_5] : memref<128x128xbf16, #tpu.memory_space<vmem>>, vector<128x128xbf16>
    %cst = arith.constant dense<0.000000e+00> : vector<8x128xf32>
    %6 = tpu.matmul %4, %5, %cst {dimension_numbers = #tpu.dot_dimension_numbers<[1], [0], [0], [1], [0, 0, 1, 1], [], []>} : vector<8x128xbf16>, vector<128x128xbf16>, vector<8x128xf32> -> vector<8x128xf32>
    %7 = arith.addf %3, %6 : vector<8x128xf32>
    %c0_6 = arith.constant 0 : index
    %c0_7 = arith.constant 0 : index
    %8 = vector.load %arg8[%c0_6, %c0_7] : memref<8x128xf32, #tpu.memory_space<vmem>>, vector<8x128xf32>
    tpu.vector_store %arg8[%c0_6, %c0_7], %7 {strides = array<i32>} : memref<8x128xf32, #tpu.memory_space<vmem>>, vector<8x128xf32>,
    %c0_i32_8 = arith.constant 0 : i32
    %9 = arith.cmpi eq, %arg1, %c0_i32_8 : i32
    %10 = arith.extui %9 : i1 to i32
    %c0_i32_9 = arith.constant 0 : i32
    %11 = arith.cmpi ne, %10, %c0_i32_9 : i32
    scf.if %11 {
      %c0_10 = arith.constant 0 : index
      %c0_11 = arith.constant 0 : index
      %12 = vector.load %arg4[%c0_10, %c0_11] : memref<3x128xf32, #tpu.memory_space<vmem>>, vector<1x128xf32>
      %c1 = arith.constant 1 : index
      %c0_12 = arith.constant 0 : index
      %13 = vector.load %arg4[%c1, %c0_12] : memref<3x128xf32, #tpu.memory_space<vmem>>, vector<1x128xf32>
      %c2 = arith.constant 2 : index
      %c0_13 = arith.constant 0 : index
      %14 = vector.load %arg4[%c2, %c0_13] : memref<3x128xf32, #tpu.memory_space<vmem>>, vector<1x128xf32>
      %c0_14 = arith.constant 0 : index
      %c0_15 = arith.constant 0 : index
      %15 = vector.load %arg8[%c0_14, %c0_15] : memref<8x128xf32, #tpu.memory_space<vmem>>, vector<8x128xf32>
      %16 = vector.broadcast %12 : vector<1x128xf32> to vector<8x128xf32>
      %17 = arith.addf %15, %16 : vector<8x128xf32>
      %cst_16 = arith.constant 0.000000e+00 : f32
      %18 = vector.broadcast %cst_16 : f32 to vector<8x128xf32>
      %19 = arith.maximumf %17, %18 : vector<8x128xf32>
      %cst_17 = arith.constant dense<0.000000e+00> : vector<8xf32>
      %20 = vector.multi_reduction <add>, %19, %cst_17 [1] : vector<8x128xf32> to vector<8xf32>
      %21 = vector.shape_cast %20 : vector<8xf32> to vector<8x1xf32>
      %cst_18 = arith.constant 3.125000e-02 : f32
      %22 = vector.broadcast %cst_18 : f32 to vector<8x1xf32>
      %23 = arith.mulf %21, %22 : vector<8x1xf32>
      %24 = arith.mulf %19, %19 : vector<8x128xf32>
      %cst_19 = arith.constant dense<0.000000e+00> : vector<8xf32>
      %25 = vector.multi_reduction <add>, %24, %cst_19 [1] : vector<8x128xf32> to vector<8xf32>
      %26 = vector.shape_cast %25 : vector<8xf32> to vector<8x1xf32>
      %cst_20 = arith.constant 3.125000e-02 : f32
      %27 = vector.broadcast %cst_20 : f32 to vector<8x1xf32>
      %28 = arith.mulf %26, %27 : vector<8x1xf32>
      %29 = arith.mulf %23, %23 : vector<8x1xf32>
      %30 = arith.subf %28, %29 : vector<8x1xf32>
      %cst_21 = arith.constant 0.000000e+00 : f32
      %31 = vector.broadcast %cst_21 : f32 to vector<8x1xf32>
      %32 = arith.maximumf %30, %31 : vector<8x1xf32>
      %33 = vector.broadcast %23 : vector<8x1xf32> to vector<8x128xf32>
      %34 = arith.subf %19, %33 : vector<8x128xf32>
      %cst_22 = arith.constant 9.99999974E-6 : f32
      %35 = vector.broadcast %cst_22 : f32 to vector<8x1xf32>
      %36 = arith.addf %32, %35 : vector<8x1xf32>
      %37 = math.rsqrt %36 : vector<8x1xf32>
      %38 = vector.broadcast %37 : vector<8x1xf32> to vector<8x128xf32>
      %39 = arith.mulf %34, %38 : vector<8x128xf32>
      %40 = vector.broadcast %13 : vector<1x128xf32> to vector<8x128xf32>
      %41 = arith.mulf %39, %40 : vector<8x128xf32>
      %42 = vector.broadcast %14 : vector<1x128xf32> to vector<8x128xf32>
      %43 = arith.addf %41, %42 : vector<8x128xf32>
      %44 = arith.truncf %43 : vector<8x128xf32> to vector<8x128xbf16>
      %c0_23 = arith.constant 0 : index
      %c0_24 = arith.constant 0 : index
      %45 = vector.load %arg5[%c0_23, %c0_24] : memref<128x128xbf16, #tpu.memory_space<vmem>>, vector<128x128xbf16>
      %cst_25 = arith.constant dense<0.000000e+00> : vector<8x128xf32>
      %46 = tpu.matmul %44, %45, %cst_25 {dimension_numbers = #tpu.dot_dimension_numbers<[1], [0], [0], [1], [0, 0, 1, 1], [], []>} : vector<8x128xbf16>, vector<128x128xbf16>, vector<8x128xf32> -> vector<8x128xf32>
      %c0_26 = arith.constant 0 : index
      %c0_27 = arith.constant 0 : index
      %47 = vector.load %arg6[%c0_26, %c0_27] : memref<1x128xf32, #tpu.memory_space<vmem>>, vector<1x128xf32>
      %48 = vector.broadcast %47 : vector<1x128xf32> to vector<8x128xf32>
      %49 = arith.addf %46, %48 : vector<8x128xf32>
      %c0_28 = arith.constant 0 : index
      %c0_29 = arith.constant 0 : index
      %50 = vector.load %arg7[%c0_28, %c0_29] : memref<8x128xf32, #tpu.memory_space<vmem>>, vector<8x128xf32>
      tpu.vector_store %arg7[%c0_28, %c0_29], %49 {strides = array<i32>} : memref<8x128xf32, #tpu.memory_space<vmem>>, vector<8x128xf32>,
    } else {
    }
    return
  }
  func.func @transform_0(%arg0: i32, %arg1: i32) -> (i32, i32) {
    %c0_i32 = arith.constant 0 : i32
    return %arg0, %arg1 : i32, i32
  }
  func.func @transform_1(%arg0: i32, %arg1: i32) -> (i32, i32) {
    %c0_i32 = arith.constant 0 : i32
    %c0_i32_0 = arith.constant 0 : i32
    return %arg1, %c0_i32 : i32, i32
  }
  func.func @transform_2(%arg0: i32, %arg1: i32) -> (i32, i32) {
    %c0_i32 = arith.constant 0 : i32
    %c0_i32_0 = arith.constant 0 : i32
    %c0_i32_1 = arith.constant 0 : i32
    return %c0_i32, %c0_i32_0 : i32, i32
  }
  func.func @transform_3(%arg0: i32, %arg1: i32) -> (i32, i32) {
    %c0_i32 = arith.constant 0 : i32
    %c0_i32_0 = arith.constant 0 : i32
    %c0_i32_1 = arith.constant 0 : i32
    return %c0_i32, %c0_i32_0 : i32, i32
  }
  func.func @transform_4(%arg0: i32, %arg1: i32) -> (i32, i32) {
    %c0_i32 = arith.constant 0 : i32
    %c0_i32_0 = arith.constant 0 : i32
    %c0_i32_1 = arith.constant 0 : i32
    return %c0_i32, %c0_i32_0 : i32, i32
  }
  func.func @transform_5(%arg0: i32, %arg1: i32) -> (i32, i32) {
    %c0_i32 = arith.constant 0 : i32
    %c0_i32_0 = arith.constant 0 : i32
    return %arg0, %c0_i32 : i32, i32
  }
}

module attributes {stable_mosaic.version = 11 : i64} {
  func.func @mlp_kernel(%arg0: i32, %arg1: i32, %arg2: memref<8x128xbf16, #tpu.memory_space<vmem>>, %arg3: memref<128x128xbf16, #tpu.memory_space<vmem>>, %arg4: memref<3x128xf32, #tpu.memory_space<vmem>>, %arg5: memref<128x128xbf16, #tpu.memory_space<vmem>>, %arg6: memref<1x128xf32, #tpu.memory_space<vmem>>, %arg7: memref<8x128xf32, #tpu.memory_space<vmem>>, %arg8: memref<8x128xf32, #tpu.memory_space<vmem>>) attributes {dimension_semantics = [#tpu.dimension_semantics<parallel>, #tpu.dimension_semantics<arbitrary>], iteration_bounds = array<i64: 2, 1>, scalar_prefetch = 0 : i64, scratch_operands = 1 : i64, tpu.core_type = #tpu.core_type<tc>, window_params = [{transform_indices = @transform_0, window_bounds = array<i64: 8, 128>}, {transform_indices = @transform_1, window_bounds = array<i64: 128, 128>}, {pipeline_mode = #tpu.pipeline_mode<synchronous>, transform_indices = @transform_2, window_bounds = array<i64: 3, 128>}, {pipeline_mode = #tpu.pipeline_mode<synchronous>, transform_indices = @transform_3, window_bounds = array<i64: 128, 128>}, {pipeline_mode = #tpu.pipeline_mode<synchronous>, transform_indices = @transform_4, window_bounds = array<i64: 1, 128>}, {transform_indices = @transform_5, window_bounds = array<i64: 8, 128>}]} {
    %c0_i32 = arith.constant 0 : i32
    %0 = arith.cmpi eq, %arg1, %c0_i32 : i32
    %1 = arith.extui %0 : i1 to i32
    %c0_i32_0 = arith.constant 0 : i32
    %2 = arith.cmpi ne, %1, %c0_i32_0 : i32
    scf.if %2 {
      %cst_10 = arith.constant 0.000000e+00 : f32
      %12 = vector.broadcast %cst_10 : f32 to vector<8x128xf32>
      %c0_11 = arith.constant 0 : index
      %c0_12 = arith.constant 0 : index
      %13 = vector.load %arg8[%c0_11, %c0_12] : memref<8x128xf32, #tpu.memory_space<vmem>>, vector<8x128xf32>
      tpu.vector_store %arg8[%c0_11, %c0_12], %12 {strides = array<i32>} : memref<8x128xf32, #tpu.memory_space<vmem>>, vector<8x128xf32>,
    } else {
    }
    %c0 = arith.constant 0 : index
    %c0_1 = arith.constant 0 : index
    %3 = vector.load %arg8[%c0, %c0_1] : memref<8x128xf32, #tpu.memory_space<vmem>>, vector<8x128xf32>
    %c0_2 = arith.constant 0 : index
    %c0_3 = arith.constant 0 : index
    %4 = vector.load %arg2[%c0_2, %c0_3] : memref<8x128xbf16, #tpu.memory_space<vmem>>, vector<8x128xbf16>
    %c0_4 = arith.constant 0 : index
    %c0_5 = arith.constant 0 : index
    %5 = vector.load %arg3[%c0_4, %c0_5] : memref<128x128xbf16, #tpu.memory_space<vmem>>, vector<128x128xbf16>
    %cst = arith.constant dense<0.000000e+00> : vector<8x128xf32>
    %6 = tpu.matmul %4, %5, %cst {dimension_numbers = #tpu.dot_dimension_numbers<[1], [0], [0], [1], [0, 0, 1, 1], [], []>} : vector<8x128xbf16>, vector<128x128xbf16>, vector<8x128xf32> -> vector<8x128xf32>
    %7 = arith.addf %3, %6 : vector<8x128xf32>
    %c0_6 = arith.constant 0 : index
    %c0_7 = arith.constant 0 : index
    %8 = vector.load %arg8[%c0_6, %c0_7] : memref<8x128xf32, #tpu.memory_space<vmem>>, vector<8x128xf32>
    tpu.vector_store %arg8[%c0_6, %c0_7], %7 {strides = array<i32>} : memref<8x128xf32, #tpu.memory_space<vmem>>, vector<8x128xf32>,
    %c0_i32_8 = arith.constant 0 : i32
    %9 = arith.cmpi eq, %arg1, %c0_i32_8 : i32
    %10 = arith.extui %9 : i1 to i32
    %c0_i32_9 = arith.constant 0 : i32
    %11 = arith.cmpi ne, %10, %c0_i32_9 : i32
    scf.if %11 {
      %c0_10 = arith.constant 0 : index
      %c0_11 = arith.constant 0 : index
      %12 = vector.load %arg4[%c0_10, %c0_11] : memref<3x128xf32, #tpu.memory_space<vmem>>, vector<1x128xf32>
      %c1 = arith.constant 1 : index
      %c0_12 = arith.constant 0 : index
      %13 = vector.load %arg4[%c1, %c0_12] : memref<3x128xf32, #tpu.memory_space<vmem>>, vector<1x128xf32>
      %c2 = arith.constant 2 : index
      %c0_13 = arith.constant 0 : index
      %14 = vector.load %arg4[%c2, %c0_13] : memref<3x128xf32, #tpu.memory_space<vmem>>, vector<1x128xf32>
      %c0_14 = arith.constant 0 : index
      %c0_15 = arith.constant 0 : index
      %15 = vector.load %arg8[%c0_14, %c0_15] : memref<8x128xf32, #tpu.memory_space<vmem>>, vector<8x128xf32>
      %16 = vector.broadcast %12 : vector<1x128xf32> to vector<8x128xf32>
      %17 = arith.addf %15, %16 : vector<8x128xf32>
      %cst_16 = arith.constant 0.000000e+00 : f32
      %18 = vector.broadcast %cst_16 : f32 to vector<8x128xf32>
      %19 = arith.maximumf %17, %18 : vector<8x128xf32>
      %cst_17 = arith.constant dense<0.000000e+00> : vector<8xf32>
      %20 = vector.multi_reduction <add>, %19, %cst_17 [1] : vector<8x128xf32> to vector<8xf32>
      %21 = vector.shape_cast %20 : vector<8xf32> to vector<8x1xf32>
      %cst_18 = arith.constant 3.125000e-02 : f32
      %22 = vector.broadcast %cst_18 : f32 to vector<8x1xf32>
      %23 = arith.mulf %21, %22 : vector<8x1xf32>
      %24 = arith.mulf %19, %19 : vector<8x128xf32>
      %cst_19 = arith.constant dense<0.000000e+00> : vector<8xf32>
      %25 = vector.multi_reduction <add>, %24, %cst_19 [1] : vector<8x128xf32> to vector<8xf32>
      %26 = vector.shape_cast %25 : vector<8xf32> to vector<8x1xf32>
      %cst_20 = arith.constant 3.125000e-02 : f32
      %27 = vector.broadcast %cst_20 : f32 to vector<8x1xf32>
      %28 = arith.mulf %26, %27 : vector<8x1xf32>
      %29 = arith.mulf %23, %23 : vector<8x1xf32>
      %30 = arith.subf %28, %29 : vector<8x1xf32>
      %cst_21 = arith.constant 0.000000e+00 : f32
      %31 = vector.broadcast %cst_21 : f32 to vector<8x1xf32>
      %32 = arith.maximumf %30, %31 : vector<8x1xf32>
      %33 = vector.broadcast %23 : vector<8x1xf32> to vector<8x128xf32>
      %34 = arith.subf %19, %33 : vector<8x128xf32>
      %cst_22 = arith.constant 9.99999974E-6 : f32
      %35 = vector.broadcast %cst_22 : f32 to vector<8x1xf32>
      %36 = arith.addf %32, %35 : vector<8x1xf32>
      %37 = math.rsqrt %36 : vector<8x1xf32>
      %38 = vector.broadcast %37 : vector<8x1xf32> to vector<8x128xf32>
      %39 = arith.mulf %34, %38 : vector<8x128xf32>
      %40 = vector.broadcast %13 : vector<1x128xf32> to vector<8x128xf32>
      %41 = arith.mulf %39, %40 : vector<8x128xf32>
      %42 = vector.broadcast %14 : vector<1x128xf32> to vector<8x128xf32>
      %43 = arith.addf %41, %42 : vector<8x128xf32>
      %44 = arith.truncf %43 : vector<8x128xf32> to vector<8x128xbf16>
      %c0_23 = arith.constant 0 : index
      %c0_24 = arith.constant 0 : index
      %45 = vector.load %arg5[%c0_23, %c0_24] : memref<128x128xbf16, #tpu.memory_space<vmem>>, vector<128x128xbf16>
      %cst_25 = arith.constant dense<0.000000e+00> : vector<8x128xf32>
      %46 = tpu.matmul %44, %45, %cst_25 {dimension_numbers = #tpu.dot_dimension_numbers<[1], [0], [0], [1], [0, 0, 1, 1], [], []>} : vector<8x128xbf16>, vector<128x128xbf16>, vector<8x128xf32> -> vector<8x128xf32>
      %c0_26 = arith.constant 0 : index
      %c0_27 = arith.constant 0 : index
      %47 = vector.load %arg6[%c0_26, %c0_27] : memref<1x128xf32, #tpu.memory_space<vmem>>, vector<1x128xf32>
      %48 = vector.broadcast %47 : vector<1x128xf32> to vector<8x128xf32>
      %49 = arith.addf %46, %48 : vector<8x128xf32>
      %c0_28 = arith.constant 0 : index
      %c0_29 = arith.constant 0 : index
      %50 = vector.load %arg7[%c0_28, %c0_29] : memref<8x128xf32, #tpu.memory_space<vmem>>, vector<8x128xf32>
      tpu.vector_store %arg7[%c0_28, %c0_29], %49 {strides = array<i32>} : memref<8x128xf32, #tpu.memory_space<vmem>>, vector<8x128xf32>,
    } else {
    }
    return
  }
  func.func @transform_0(%arg0: i32, %arg1: i32) -> (i32, i32) {
    %c0_i32 = arith.constant 0 : i32
    return %arg0, %arg1 : i32, i32
  }
  func.func @transform_1(%arg0: i32, %arg1: i32) -> (i32, i32) {
    %c0_i32 = arith.constant 0 : i32
    %c0_i32_0 = arith.constant 0 : i32
    return %arg1, %c0_i32 : i32, i32
  }
  func.func @transform_2(%arg0: i32, %arg1: i32) -> (i32, i32) {
    %c0_i32 = arith.constant 0 : i32
    %c0_i32_0 = arith.constant 0 : i32
    %c0_i32_1 = arith.constant 0 : i32
    return %c0_i32, %c0_i32_0 : i32, i32
  }
  func.func @transform_3(%arg0: i32, %arg1: i32) -> (i32, i32) {
    %c0_i32 = arith.constant 0 : i32
    %c0_i32_0 = arith.constant 0 : i32
    %c0_i32_1 = arith.constant 0 : i32
    return %c0_i32, %c0_i32_0 : i32, i32
  }
  func.func @transform_4(%arg0: i32, %arg1: i32) -> (i32, i32) {
    %c0_i32 = arith.constant 0 : i32
    %c0_i32_0 = arith.constant 0 : i32
    %c0_i32_1 = arith.constant 0 : i32
    return %c0_i32, %c0_i32_0 : i32, i32
  }
  func.func @transform_5(%arg0: i32, %arg1: i32) -> (i32, i32) {
    %c0_i32 = arith.constant 0 : i32
    %c0_i32_0 = arith.constant 0 : i32
    return %arg0, %c0_i32 : i32, i32
  }
}

</mosaic_0001>

<bundles_post_ra>
// kernel: tpu_custom_call.1
= control target key start
LH: loop header
LB: loop body
LE: loop exit
PB: predicated region body
PF: predicated region fallthrough
CT: control target
= control target key end

     0   :  { %s1346_s0 = inlined_call_operand.hbm [shape: bf16[16,128], index: 0, kind: input, shape index: {}]   ;;  %s1347_s1 = inlined_call_operand.hbm [shape: bf16[128,128], index: 1, kind: input, shape index: {}]   ;;  %s1348_s2 = inlined_call_operand.hbm [shape: f32[3,128], index: 2, kind: input, shape index: {}]   ;;  %s1349_s3 = inlined_call_operand.hbm [shape: bf16[128,128], index: 3, kind: input, shape index: {}]   ;;  %s1350_s4 = inlined_call_operand.vmem [shape: f32[1,128], index: 4, kind: input, shape index: {}]   ;;  %s1351_s5 = inlined_call_operand.hbm [shape: f32[16,128], index: 5, kind: output, shape index: {}]  }
   0x1   :  { %1356 = sst [smem:[#allocation16_spill]] %s1347_s1 }
   0x2   :  { %10 = vsyncpa [#allocation4], 0 }
   0x3   :  { %12 = vsyncpa [#allocation4 + $0x1], 0 }
   0x4   :  { %13 = vsyncpa [#allocation7], 0 }
   0x5   :  { %14 = vsyncpa [#allocation10], 0 }
   0x6   :  { %15 = vsyncpa [#allocation5], 0 }
   0x7   :  { %17 = vsyncpa [#allocation5 + $0x1], 0  ;;  %s1141_s18 = smov 0   ;;  %s1143_s19 = smov 0  }
   0x8   :  { %s1145_s20 = smov 0   ;;  %s1147_s21 = smov 0  }
   0x9   :  { %s1149_s22 = smov 0   ;;  %s1151_s23 = smov 0  }
   0xa LB: > { %s694_s24 = sadd.s32 4294967295, %s1100_s23   ;;  %s695_s25 = sadd.s32 4294967294, %s1100_s23   ;;  %s1100_s23 = sphi %s1151_s23, %s23_s23   ;;  %s1096_s22 = sphi %s1149_s22, %s1375_s22   ;;  %s1092_s21 = sphi %s1147_s21, %s1374_s21   ;;  %s1088_s20 = sphi %s1145_s20, %s1373_s20   ;;  %s1084_s19 = sphi %s1143_s19, %s1372_s19   ;;  %s1080_s18 = sphi %s1141_s18, %s1371_s18  }
   0xb   : > { %p57_p0 = scmp.ne.s32.totalorder %s1084_s19, %s1080_s18  ;;  %p1175_p1 = scmp.eq.s32.totalorder %s694_s24, 0 }
   0xc   : > { %p1179_p2 = scmp.eq.s32.totalorder %s694_s24, 1  ;;  %p176_p3 = scmp.eq.s32.totalorder %s695_s25, 1 }
   0xd   : > { %s1357_s26 = scalar_select %p1175_p1, 1, 0 }
   0xe   : > { %p1185_p4 = por %p1175_p1, %p57_p0  ;;  %p696_p5 = scmp.ge.s32.totalorder %s1100_s23, 1 }
   0xf   : > { %p1190_p6 = por %p176_p3, %p57_p0  ;;  %p183_p7 = scmp.lt.s32.totalorder %s1100_s23, 3 }
  0x10   : > { %s1359_s28 = scalar_select %p1185_p4, 1, 0 }
  0x11   : > { %s1360_s29 = scalar_select %p1190_p6, 1, 0 }
  0x12   : > { %p1195_p8 = pnand %p696_p5, %p183_p7  ;;  %s1102_s6 = smov [#allocation6]  }
  0x13   : > { %s198_s7 = sshll.u32 %s1102_s6, 4  ;;  %s1103_s9 = smov [#allocation8]   ;;  %s199_s7 = int_to_ptr.vmem [resolvable:$true] %s198_s7 }
  0x14   : > { %s1361_s30 = scalar_select %p1195_p8, 1, 0 }
  0x15   : > { %p807_p9 = pneg %p1195_p8  ;;  %s212_s10 = sshll.u32 %s1103_s9, 4  ;;  %s213_s10 = int_to_ptr.vmem [resolvable:$true] %s212_s10 }
  0x16   : > { %s1104_s11 = smov [#allocation9]   ;;  %s917_s13 = scalar_lea.vmem %s199_s7, 1024 }
  0x17   : > { %p1204_p11 = pnand %p807_p9, %p1175_p1  ;;  %s222_s12 = sshll.u32 %s1104_s11, 4  ;;  %s223_s12 = int_to_ptr.vmem [resolvable:$true] %s222_s12 }
  0x18   : > { %p918_p13 = scmp.ne.s32.totalorder %s199_s7, %s917_s13  ;;  %p925_p5 = scmp.lt.s32.totalorder %s199_s7, %s199_s7 }
  0x19   : > { %p908_p12 = pneg %p1204_p11  ;;  %p926_p7 = scmp.lt.s32.totalorder %s917_s13, %s917_s13 }
  0x1b   : > { %p920_p0 = pnand %p918_p13, %p908_p12  ;;  %p927_p9 = por %p926_p7, %p925_p5 }
  0x1d   : > { %p921_p3 = pneg %p920_p0 }
  0x1f   : > { %p928_p10 = pnand %p927_p9, %p921_p3 }
  0x21   : > { %931 = shalt.err (!%p928_p10)
}
  0x22   : > { %s1105_s14 = smov 64   ;;  %s1106_s15 = smov 4  }
  0x23   : > { %s1363_s1 = sld [smem:[#allocation16_spill]]  ;;  %s943_s24 = scalar_lea.vmem %s213_s10, 64 }
  0x24   : > { %p944_p6 = scmp.ne.s32.totalorder %s213_s10, %s943_s24  ;;  %p951_p1 = scmp.lt.s32.totalorder %s213_s10, %s213_s10 }
  0x25   : > { %p952_p4 = scmp.lt.s32.totalorder %s943_s24, %s943_s24 }
  0x26   : > { %p946_p13 = pnand %p944_p6, %p908_p12 }
  0x27   : > { %p953_p5 = por %p952_p4, %p951_p1 }
  0x28   : > { %p947_p0 = pneg %p946_p13 }
  0x29   : > { %810 = dma.hbm_to_vmem [thread:$0]  (!%p1204_p11), %s1363_s1, 1024, %s199_s7, [#allocation7], %s1105_s14, %s1105_s14, %s1106_s15  }
  0x2a   : > { %p954_p3 = pnand %p953_p5, %p947_p0 }
  0x2c   : > { %957 = shalt.err (!%p954_p3)
}
  0x2d   : > { %813 = dma.hbm_to_vmem [thread:$0]  (!%p1204_p11), %s1348_s2, 64, %s213_s10, [#allocation7]  }
  0x2e   : > { %s969_s7 = scalar_lea.vmem %s223_s12, 1024  ;;  %p977_p9 = scmp.lt.s32.totalorder %s223_s12, %s223_s12 }
  0x2f   : > { %p970_p10 = scmp.ne.s32.totalorder %s223_s12, %s969_s7  ;;  %p978_p13 = scmp.lt.s32.totalorder %s969_s7, %s969_s7 }
  0x31   : > { %p972_p7 = pnand %p970_p10, %p908_p12  ;;  %p979_p8 = por %p978_p13, %p977_p9 }
  0x33   : > { %p973_p6 = pneg %p972_p7 }
  0x35   : > { %p980_p1 = pnand %p979_p8, %p973_p6 }
  0x37   : > { %983 = shalt.err (!%p980_p1)
}
  0x38   : > { %816 = dma.hbm_to_vmem [thread:$0]  (!%p1204_p11), %s1349_s3, 1024, %s223_s12, [#allocation10], %s1105_s14, %s1105_s14, %s1106_s15  }
  0x39   : > { %s44_s10 = sadd.s32 1, %s1088_s20  ;;  %s35_s13 = sadd.s32 1, %s1096_s22 }
  0x3a   : > { %p51_p4 = scmp.ne.s32.totalorder %s1088_s20, %s1084_s19  ;;  %p37_p8 = scmp.ge.s32.totalorder %s35_s13, 2 }
  0x3b   : > { %p52_p12 = scmp.eq.s32.totalorder %s1100_s23, 0  ;;  %p828_p5 = scmp.lt.s32.totalorder %s1100_s23, 2 }
  0x3c   : > { %p1241_p0 = por %p1179_p2, %p51_p4  ;;  %s1377_s13 = smov (%p37_p8, %s35_s13), 0 }
  0x3d   : > { %p53_p3 = por %p52_p12, %p51_p4  ;;  %s239_s16 = sand.u32 1, %s1088_s20  }
  0x3e   : > { %s39_s17 = ssub.s32 %s1096_s22, %s1377_s13  ;;  %s701_s12 = sshll.u32 %s239_s16, 2 }
  0x3f   : > { %p42_p10 = scmp.eq.s32.totalorder %s39_s17, 0  ;;  %s702_s14 = sshll.u32 %s1096_s22, 6 }
  0x40   : > { %s249_s27 = scalar_lea.hbm %s1346_s0, %s702_s14  ;;  %s243_s6 = scalar_lea.vmem [#allocation3], %s701_s12 }
  0x41   : > { %s1253_s15 = scalar_select %p42_p10, %s1088_s20, %s44_s10  }
  0x42   : > { %s251_s7 = sshll.u32 %s243_s6, 4  ;;  %p1260_p2 = pnand %p828_p5, %p53_p3  ;;  %s252_s7 = int_to_ptr.vmem [resolvable:$true] %s251_s7 }
  0x43   : > { %s240_s11 = scalar_lea.sflag [#allocation4], %s239_s16  ;;  %s997_s17 = scalar_lea.vmem %s252_s7, 64 }
  0x44   : > { %p986_p11 = pneg %p1260_p2  ;;  %p998_p7 = scmp.ne.s32.totalorder %s252_s7, %s997_s17 }
  0x45   : > { %s1107_s10 = smov [#allocation3]  }
  0x46   : > { %p1000_p6 = pnand %p998_p7, %p986_p11  ;;  %s1002_s1 = sshll.u32 %s1107_s10, 4  ;;  %s1003_s1 = int_to_ptr.vmem [resolvable:$false] %s1002_s1 }
  0x47   : > { %s1004_s14 = scalar_lea.vmem %s1003_s1, 128  ;;  %p1005_p13 = scmp.lt.s32.totalorder %s252_s7, %s1003_s1 }
  0x48   : > { %p1001_p9 = pneg %p1000_p6  ;;  %p1006_p1 = scmp.lt.s32.totalorder %s1004_s14, %s997_s17 }
  0x4a   : > { %p1007_p4 = por %p1006_p1, %p1005_p13 }
  0x4c   : > { %p1008_p8 = pnand %p1007_p4, %p1001_p9 }
  0x4e   : > { %1011 = shalt.err (!%p1008_p8)
}
  0x4f   : > { %820 = dma.hbm_to_vmem [thread:$0]  (!%p1260_p2), %s249_s27, 64, %s252_s7, %s240_s11  }
  0x50   : > { %p1366_p12 = scmp.ne.s32.totalorder %s1361_s30, 0 }
  0x51   : > { %s1271_s16 = sand.u32 (!%p1366_p12), 1, %s1084_s19   ;;  %p1367_p5 = scmp.ne.s32.totalorder (!%p1366_p12), %s1359_s28, 0 }
  0x52   : > { %260 = sbr.rel (%p1366_p12) target bundleno = 705 (0x2c1), region = 40  ;;  %s704_s12 = sshll.u32 (!%p1366_p12), %s1271_s16, 2 }
  0x53   : > { %s263_s24 = scalar_lea.sflag (!%p1366_p12), [#allocation4], %s1271_s16  ;;  %s1275_s25 = scalar_lea.vmem (!%p1366_p12), [#allocation3], %s704_s12 }
  0x57   : > { %1063 = dma.done.wait (%p1367_p5), %s263_s24, 64  }
  0x58   : > { %1065 = vsyncadd (%p1367_p5), %s263_s24, 4294967232  ;;  %p1368_p3 = scmp.ne.s32.totalorder %s1357_s26, 0 }
  0x5a   : > { %1067 = dma.done.wait (%p1368_p3), [#allocation7], 1088  }
  0x5b   : > { %1069 = vsyncadd (%p1368_p3), [#allocation7], 4294966208 }
  0x5c   : > { %1071 = dma.done.wait (%p1368_p3), [#allocation10], 1024  }
  0x5d   : > { %1073 = vsyncadd (%p1368_p3), [#allocation10], 4294966272  ;;  %v1108_v0 = vmov 0.0   ;;  %vm1109_vm0 = vmmov 0   ;;  %v888_v1 = vld [vmem:[#allocation6 + $0x38] sm:$0xff]   ;;  %v889_v2 = vld [vmem:[#allocation6 + $0x30] sm:$0xff]  }
  0x5e   : > { %751 = vmatprep.subr.bf16.mxu0 %v1108_v0  ;;  %767 = vmatprep.mubr.msk.bf16.mxu0 %vm1109_vm0, %v1108_v0  ;;  %v890_v3 = vld [vmem:[#allocation6 + $0x28] sm:$0xff]   ;;  %v891_v4 = vld [vmem:[#allocation6 + $0x20] sm:$0xff]   ;;  %v892_v5 = vld [vmem:[#allocation6 + $0x18] sm:$0xff]   ;;  %s708_s1 = sshll.u32 %s1271_s16, 3  ;;  %s730_s30 = sshll.u32 %s1092_s21, 7 }
  0x5f   : > { %771 = vmatprep.subr.bf16.mxu1 %v1108_v0  ;;  %787 = vmatprep.mubr.msk.bf16.mxu1 %vm1109_vm0, %v1108_v0  ;;  %v893_v6 = vld [vmem:[#allocation6 + $0x10] sm:$0xff]   ;;  %v894_v7 = vld [vmem:[#allocation6 + $0x8] sm:$0xff]   ;;  %v895_v8 = vld [vmem:[#allocation6] sm:$0xff]   ;;  %s304_s27 = scalar_lea.vmem [#allocation11], %s708_s1  ;;  %s1298_s11 = scalar_lea.hbm %s1351_s5, %s730_s30 }
  0x60   : > { %752 = vmatpush3.bf16.msra.mxu0 %v888_v1  ;;  %v313_v9 = vld [vmem:[%s1275_s25] sm:$0xf]  ;;  %v717_v10 = vld [vmem:[#allocation8] ss:$0 sm:$0xff]  ;;  %v898_v20 = vld [vmem:[#allocation9 + $0x28] sm:$0xff]   ;;  %s584_s6 = sshll.u32 %s304_s27, 4  ;;  %s1300_s6 = int_to_ptr.vmem [resolvable:$true] %s584_s6 }
  0x61   : > { %753 = vmatprep.subr.bf16.mxu0 %v1108_v0  ;;  %v896_v18 = vld [vmem:[#allocation9 + $0x38] sm:$0xff]   ;;  %v897_v19 = vld [vmem:[#allocation9 + $0x30] sm:$0xff]   ;;  %v899_v21 = vld [vmem:[#allocation9 + $0x20] sm:$0xff]   ;;  %s571_s17 = scalar_lea.sflag [#allocation5], %s1271_s16  ;;  %s1012_s10 = scalar_lea.vmem %s1300_s6, 128 }
  0x62   : > { %772 = vmatpush3.bf16.msra.mxu1 %v896_v18  ;;  %v900_v22 = vld [vmem:[#allocation9 + $0x18] sm:$0xff]   ;;  %v901_v23 = vld [vmem:[#allocation9 + $0x10] sm:$0xff]   ;;  %v902_v24 = vld [vmem:[#allocation9 + $0x8] sm:$0xff]   ;;  %p1013_p10 = scmp.ne.s32.totalorder %s1300_s6, %s1012_s10  ;;  %s1110_s21 = smov [#allocation11]  }
  0x63   : > { %773 = vmatprep.subr.bf16.mxu1 %v1108_v0  ;;  %v903_v25 = vld [vmem:[#allocation9] sm:$0xff]   ;;  %v718_v36 = vld [vmem:[#allocation8 + $0x1] ss:$0 sm:$0xff]  ;;  %v719_v38 = vld [vmem:[#allocation8 + $0x2] ss:$0 sm:$0xff]  ;;  %s1016_s14 = sshll.u32 %s1110_s21, 4  ;;  %s1017_s14 = int_to_ptr.vmem [resolvable:$false] %s1016_s14 }
  0x64   : > { %754 = vmatpush3.bf16.msra.mxu0 %v889_v2  ;;  %v720_v42 = vld [vmem:[%s1350_s4] ss:$0 sm:$0xff]  ;;  %p1014_p2 = pnand %p1013_p10, %p1241_p0  ;;  %s1018_s12 = scalar_lea.vmem %s1017_s14, 256 }
  0x65   : > { %755 = vmatprep.subr.bf16.mxu0 %v1108_v0  ;;  %p1019_p7 = scmp.lt.s32.totalorder %s1300_s6, %s1017_s14  ;;  %p1020_p6 = scmp.lt.s32.totalorder %s1018_s12, %s1012_s10 }
  0x66   : > { %774 = vmatpush3.bf16.msra.mxu1 %v897_v19  ;;  %p1015_p11 = pneg %p1014_p2 }
  0x67   : > { %775 = vmatprep.subr.bf16.mxu1 %v1108_v0  ;;  %p1021_p9 = por %p1020_p6, %p1019_p7 }
  0x68   : > { %756 = vmatpush3.bf16.msra.mxu0 %v890_v3 }
  0x69   : > { %757 = vmatprep.subr.bf16.mxu0 %v1108_v0  ;;  %p1022_p13 = pnand %p1021_p9, %p1015_p11 }
  0x6a   : > { %776 = vmatpush3.bf16.msra.mxu1 %v898_v20 }
  0x6b   : > { %777 = vmatprep.subr.bf16.mxu1 %v1108_v0 }
  0x6c   : > { %758 = vmatpush3.bf16.msra.mxu0 %v891_v4 }
  0x6d   : > { %759 = vmatprep.subr.bf16.mxu0 %v1108_v0 }
  0x6e   : > { %778 = vmatpush3.bf16.msra.mxu1 %v899_v21 }
  0x6f   : > { %779 = vmatprep.subr.bf16.mxu1 %v1108_v0 }
  0x70   : > { %760 = vmatpush3.bf16.msra.mxu0 %v892_v5 }
  0x71   : > { %761 = vmatprep.subr.bf16.mxu0 %v1108_v0 }
  0x72   : > { %780 = vmatpush3.bf16.msra.mxu1 %v900_v22 }
  0x73   : > { %781 = vmatprep.subr.bf16.mxu1 %v1108_v0 }
  0x74   : > { %762 = vmatpush3.bf16.msra.mxu0 %v893_v6 }
  0x75   : > { %763 = vmatprep.subr.bf16.mxu0 %v1108_v0 }
  0x76   : > { %782 = vmatpush3.bf16.msra.mxu1 %v901_v23 }
  0x77   : > { %783 = vmatprep.subr.bf16.mxu1 %v1108_v0 }
  0x78   : > { %764 = vmatpush3.bf16.msra.mxu0 %v894_v7 }
  0x79   : > { %765 = vmatprep.subr.bf16.mxu0 %v1108_v0 }
  0x7a   : > { %784 = vmatpush3.bf16.msra.mxu1 %v902_v24 }
  0x7b   : > { %785 = vmatprep.subr.bf16.mxu1 %v1108_v0 }
  0x7c   : > { %766 = vmatpush3.bf16.msra.mxu0 %v895_v8 }
  0x7e   : > { %786 = vmatpush3.bf16.msra.mxu1 %v903_v25 }
  0x7f   : > { %768 = vmatmul.mubr.bf16.vlgmr.msra.gmra.mxu0 %v313_v9 }
 0x13f   : > { %v412_v11 = vpop.f32.mrf.mxu0 }
 0x140   : > { %v431_v12 = vadd.f32 %v717_v10, %v412_v11 }
 0x141   : > { %v769_v13 = vpop.f32.mrf.mxu0 }
 0x142   : > { %v432_v14 = vmax.f32 %v431_v12, 0.0 }
 0x143   : > { %v415_v15 = vpop.f32.mrf.mxu0 }
 0x144   : > { %433 = vadd.xlane.f32.xlu0 %v432_v14  ;;  %v436_v17 = vmul.f32 %v432_v14, %v432_v14 }
 0x145   : > { %v770_v16 = vpop.f32.mrf.mxu0 }
 0x148   : > { %437 = vadd.xlane.f32.xlu0 %v436_v17 }
 0x1cd   : > { %v434_v26 = vpop.xlane.xlu0 %433 }
 0x1ce   : > { %v435_v27 = vmul.f32 0.03125, %v434_v26 }
 0x1d0   : > { %v440_v29 = vmul.f32 %v435_v27, %v435_v27  ;;  %v443_v34 = vsub.f32 %v432_v14, %v435_v27 }
 0x1d1   : > { %v438_v28 = vpop.xlane.xlu0 %437 }
 0x1d2   : > { %v439_v30 = vmul.f32 0.03125, %v438_v28 }
 0x1d4   : > { %v441_v31 = vsub.f32 %v439_v30, %v440_v29 }
 0x1d6   : > { %v442_v32 = vmax.f32 %v441_v31, 0.0 }
 0x1d8   : > { %v444_v33 = vadd.f32 1e-05, %v442_v32 }
 0x1da   : > { %904 = vrsqrt.f32 %v444_v33 }
 0x1e7   : > { %v905_v35 = vpop.eup %904 }
 0x1e8   : > { %v446_v37 = vmul.f32 %v905_v35, %v443_v34 }
 0x1ea   : > { %v451_v39 = vmul.f32 %v718_v36, %v446_v37 }
 0x1ec   : > { %v456_v40 = vadd.f32 %v719_v38, %v451_v39 }
 0x1ee   : > { %v457_v41 = vpack.c.bf16 %v456_v40, %v456_v40 }
 0x1f0   : > { %788 = vmatmul.mubr.bf16.vlgmr.msra.gmra.mxu1 %v457_v41 }
 0x2b0   : > { %v563_v43 = vpop.f32.mrf.mxu1 }
 0x2b1   : > { %v564_v44 = vadd.f32 %v720_v42, %v563_v43 }
 0x2b2   : > { %v789_v45 = vpop.f32.mrf.mxu1 }
 0x2b3   : > { %569 = vst [vmem:[%s304_s27] sm:$0xff] %v564_v44 }
 0x2b4   : > { %v566_v46 = vpop.f32.mrf.mxu1 }
 0x2b5   : > { %1025 = shalt.err (!%p1022_p13)
}
 0x2b6   : > { %s1026_s24 = scalar_lea.hbm %s1298_s11, 128  ;;  %s1030_s1 = scalar_lea.hbm %s1351_s5, 256 }
 0x2b7   : > { %p1027_p1 = scmp.ne.s32.totalorder %s1298_s11, %s1026_s24  ;;  %p1031_p12 = scmp.lt.s32.totalorder %s1298_s11, %s1351_s5 }
 0x2b8   : > { %p1032_p5 = scmp.lt.s32.totalorder %s1030_s1, %s1026_s24 }
 0x2b9   : > { %p1028_p4 = pnand %p1027_p1, %p1241_p0 }
 0x2ba   : > { %p1033_p3 = por %p1032_p5, %p1031_p12 }
 0x2bb   : > { %p1029_p8 = pneg %p1028_p4 }
 0x2bd   : > { %p1034_p10 = pnand %p1033_p3, %p1029_p8 }
 0x2bf   : > { %1037 = shalt.err (!%p1034_p10)
}
 0x2c0   : > { %805 = dma.vmem_to_hbm [thread:$0]  (%p1241_p0), %s1300_s6, 128, %s1298_s11, %s571_s17   ;;  %v790_v47 = vpop.f32.mrf.mxu1 }
 0x2c1 PF: > { %s596_s30 = sand.u32 1, %s1080_s18   ;;  %p1369_p2 = scmp.ne.s32.totalorder %s1360_s29, 0 }
 0x2c2   : > { %p1370_p11 = scmp.ge.s32.totalorder %s1100_s23, 2  ;;  %s597_s27 = scalar_lea.sflag [#allocation5], %s596_s30 }
 0x2c4   : > { %p822_p7 = pnand %p1370_p11, %p1369_p2 }
 0x2c6   : > { %p823_p6 = pneg %p822_p7 }
 0x2c8   : > { %1075 = dma.done.wait (%p823_p6), %s597_s27, 128  }
 0x2c9   : > { %1077 = vsyncadd (%p823_p6), %s597_s27, 4294967168  ;;  %s23_s23 = sadd.s32 1, %s1100_s23   ;;  %s1371_s18 = smov %s1084_s19 }
 0x2ca   : > { %p20_p9 = scmp.ge.s32.totalorder %s23_s23, 4   ;;  %s1372_s19 = smov %s1088_s20 }
 0x2cb   : > { %s1373_s20 = smov %s1253_s15  ;;  %s1374_s21 = smov %s1096_s22 }
 0x2cc   : > { %s1375_s22 = smov %s1377_s13  ;;  %22 = sbr.rel (!%p20_p9) target bundleno = 10 (0xa), region = 106 }
 0x2d1   :  { %602 = vsyncpa [#allocation4], 1 }
 0x2d2   :  { %604 = vsyncpa [#allocation4 + $0x1], 1 }
 0x2d3   :  { %605 = vsyncpa [#allocation7], 1 }
 0x2d4   :  { %606 = vsyncpa [#allocation10], 1 }
 0x2d5   :  { %607 = vsyncpa [#allocation5], 1 }
 0x2d6   :  { %609 = vsyncpa [#allocation5 + $0x1], 1 }

// kernel: tpu_custom_call.1
= control target key start
LH: loop header
LB: loop body
LE: loop exit
PB: predicated region body
PF: predicated region fallthrough
CT: control target
= control target key end

     0   :  { %s1346_s0 = inlined_call_operand.hbm [shape: bf16[16,128], index: 0, kind: input, shape index: {}]   ;;  %s1347_s1 = inlined_call_operand.hbm [shape: bf16[128,128], index: 1, kind: input, shape index: {}]   ;;  %s1348_s2 = inlined_call_operand.hbm [shape: f32[3,128], index: 2, kind: input, shape index: {}]   ;;  %s1349_s3 = inlined_call_operand.hbm [shape: bf16[128,128], index: 3, kind: input, shape index: {}]   ;;  %s1350_s4 = inlined_call_operand.vmem [shape: f32[1,128], index: 4, kind: input, shape index: {}]   ;;  %s1351_s5 = inlined_call_operand.hbm [shape: f32[16,128], index: 5, kind: output, shape index: {}]  }
   0x1   :  { %1356 = sst [smem:[#allocation16_spill]] %s1347_s1 }
   0x2   :  { %10 = vsyncpa [#allocation4], 0 }
   0x3   :  { %12 = vsyncpa [#allocation4 + $0x1], 0 }
   0x4   :  { %13 = vsyncpa [#allocation7], 0 }
   0x5   :  { %14 = vsyncpa [#allocation10], 0 }
   0x6   :  { %15 = vsyncpa [#allocation5], 0 }
   0x7   :  { %17 = vsyncpa [#allocation5 + $0x1], 0  ;;  %s1141_s18 = smov 0   ;;  %s1143_s19 = smov 0  }
   0x8   :  { %s1145_s20 = smov 0   ;;  %s1147_s21 = smov 0  }
   0x9   :  { %s1149_s22 = smov 0   ;;  %s1151_s23 = smov 0  }
   0xa LB: > { %s694_s24 = sadd.s32 4294967295, %s1100_s23   ;;  %s695_s25 = sadd.s32 4294967294, %s1100_s23   ;;  %s1100_s23 = sphi %s1151_s23, %s23_s23   ;;  %s1096_s22 = sphi %s1149_s22, %s1375_s22   ;;  %s1092_s21 = sphi %s1147_s21, %s1374_s21   ;;  %s1088_s20 = sphi %s1145_s20, %s1373_s20   ;;  %s1084_s19 = sphi %s1143_s19, %s1372_s19   ;;  %s1080_s18 = sphi %s1141_s18, %s1371_s18  }
   0xb   : > { %p57_p0 = scmp.ne.s32.totalorder %s1084_s19, %s1080_s18  ;;  %p1175_p1 = scmp.eq.s32.totalorder %s694_s24, 0 }
   0xc   : > { %p1179_p2 = scmp.eq.s32.totalorder %s694_s24, 1  ;;  %p176_p3 = scmp.eq.s32.totalorder %s695_s25, 1 }
   0xd   : > { %s1357_s26 = scalar_select %p1175_p1, 1, 0 }
   0xe   : > { %p1185_p4 = por %p1175_p1, %p57_p0  ;;  %p696_p5 = scmp.ge.s32.totalorder %s1100_s23, 1 }
   0xf   : > { %p1190_p6 = por %p176_p3, %p57_p0  ;;  %p183_p7 = scmp.lt.s32.totalorder %s1100_s23, 3 }
  0x10   : > { %s1359_s28 = scalar_select %p1185_p4, 1, 0 }
  0x11   : > { %s1360_s29 = scalar_select %p1190_p6, 1, 0 }
  0x12   : > { %p1195_p8 = pnand %p696_p5, %p183_p7  ;;  %s1102_s6 = smov [#allocation6]  }
  0x13   : > { %s198_s7 = sshll.u32 %s1102_s6, 4  ;;  %s1103_s9 = smov [#allocation8]   ;;  %s199_s7 = int_to_ptr.vmem [resolvable:$true] %s198_s7 }
  0x14   : > { %s1361_s30 = scalar_select %p1195_p8, 1, 0 }
  0x15   : > { %p807_p9 = pneg %p1195_p8  ;;  %s212_s10 = sshll.u32 %s1103_s9, 4  ;;  %s213_s10 = int_to_ptr.vmem [resolvable:$true] %s212_s10 }
  0x16   : > { %s1104_s11 = smov [#allocation9]   ;;  %s917_s13 = scalar_lea.vmem %s199_s7, 1024 }
  0x17   : > { %p1204_p11 = pnand %p807_p9, %p1175_p1  ;;  %s222_s12 = sshll.u32 %s1104_s11, 4  ;;  %s223_s12 = int_to_ptr.vmem [resolvable:$true] %s222_s12 }
  0x18   : > { %p918_p13 = scmp.ne.s32.totalorder %s199_s7, %s917_s13  ;;  %p925_p5 = scmp.lt.s32.totalorder %s199_s7, %s199_s7 }
  0x19   : > { %p908_p12 = pneg %p1204_p11  ;;  %p926_p7 = scmp.lt.s32.totalorder %s917_s13, %s917_s13 }
  0x1b   : > { %p920_p0 = pnand %p918_p13, %p908_p12  ;;  %p927_p9 = por %p926_p7, %p925_p5 }
  0x1d   : > { %p921_p3 = pneg %p920_p0 }
  0x1f   : > { %p928_p10 = pnand %p927_p9, %p921_p3 }
  0x21   : > { %931 = shalt.err (!%p928_p10)
}
  0x22   : > { %s1105_s14 = smov 64   ;;  %s1106_s15 = smov 4  }
  0x23   : > { %s1363_s1 = sld [smem:[#allocation16_spill]]  ;;  %s943_s24 = scalar_lea.vmem %s213_s10, 64 }
  0x24   : > { %p944_p6 = scmp.ne.s32.totalorder %s213_s10, %s943_s24  ;;  %p951_p1 = scmp.lt.s32.totalorder %s213_s10, %s213_s10 }
  0x25   : > { %p952_p4 = scmp.lt.s32.totalorder %s943_s24, %s943_s24 }
  0x26   : > { %p946_p13 = pnand %p944_p6, %p908_p12 }
  0x27   : > { %p953_p5 = por %p952_p4, %p951_p1 }
  0x28   : > { %p947_p0 = pneg %p946_p13 }
  0x29   : > { %810 = dma.hbm_to_vmem [thread:$0]  (!%p1204_p11), %s1363_s1, 1024, %s199_s7, [#allocation7], %s1105_s14, %s1105_s14, %s1106_s15  }
  0x2a   : > { %p954_p3 = pnand %p953_p5, %p947_p0 }
  0x2c   : > { %957 = shalt.err (!%p954_p3)
}
  0x2d   : > { %813 = dma.hbm_to_vmem [thread:$0]  (!%p1204_p11), %s1348_s2, 64, %s213_s10, [#allocation7]  }
  0x2e   : > { %s969_s7 = scalar_lea.vmem %s223_s12, 1024  ;;  %p977_p9 = scmp.lt.s32.totalorder %s223_s12, %s223_s12 }
  0x2f   : > { %p970_p10 = scmp.ne.s32.totalorder %s223_s12, %s969_s7  ;;  %p978_p13 = scmp.lt.s32.totalorder %s969_s7, %s969_s7 }
  0x31   : > { %p972_p7 = pnand %p970_p10, %p908_p12  ;;  %p979_p8 = por %p978_p13, %p977_p9 }
  0x33   : > { %p973_p6 = pneg %p972_p7 }
  0x35   : > { %p980_p1 = pnand %p979_p8, %p973_p6 }
  0x37   : > { %983 = shalt.err (!%p980_p1)
}
  0x38   : > { %816 = dma.hbm_to_vmem [thread:$0]  (!%p1204_p11), %s1349_s3, 1024, %s223_s12, [#allocation10], %s1105_s14, %s1105_s14, %s1106_s15  }
  0x39   : > { %s44_s10 = sadd.s32 1, %s1088_s20  ;;  %s35_s13 = sadd.s32 1, %s1096_s22 }
  0x3a   : > { %p51_p4 = scmp.ne.s32.totalorder %s1088_s20, %s1084_s19  ;;  %p37_p8 = scmp.ge.s32.totalorder %s35_s13, 2 }
  0x3b   : > { %p52_p12 = scmp.eq.s32.totalorder %s1100_s23, 0  ;;  %p828_p5 = scmp.lt.s32.totalorder %s1100_s23, 2 }
  0x3c   : > { %p1241_p0 = por %p1179_p2, %p51_p4  ;;  %s1377_s13 = smov (%p37_p8, %s35_s13), 0 }
  0x3d   : > { %p53_p3 = por %p52_p12, %p51_p4  ;;  %s239_s16 = sand.u32 1, %s1088_s20  }
  0x3e   : > { %s39_s17 = ssub.s32 %s1096_s22, %s1377_s13  ;;  %s701_s12 = sshll.u32 %s239_s16, 2 }
  0x3f   : > { %p42_p10 = scmp.eq.s32.totalorder %s39_s17, 0  ;;  %s702_s14 = sshll.u32 %s1096_s22, 6 }
  0x40   : > { %s249_s27 = scalar_lea.hbm %s1346_s0, %s702_s14  ;;  %s243_s6 = scalar_lea.vmem [#allocation3], %s701_s12 }
  0x41   : > { %s1253_s15 = scalar_select %p42_p10, %s1088_s20, %s44_s10  }
  0x42   : > { %s251_s7 = sshll.u32 %s243_s6, 4  ;;  %p1260_p2 = pnand %p828_p5, %p53_p3  ;;  %s252_s7 = int_to_ptr.vmem [resolvable:$true] %s251_s7 }
  0x43   : > { %s240_s11 = scalar_lea.sflag [#allocation4], %s239_s16  ;;  %s997_s17 = scalar_lea.vmem %s252_s7, 64 }
  0x44   : > { %p986_p11 = pneg %p1260_p2  ;;  %p998_p7 = scmp.ne.s32.totalorder %s252_s7, %s997_s17 }
  0x45   : > { %s1107_s10 = smov [#allocation3]  }
  0x46   : > { %p1000_p6 = pnand %p998_p7, %p986_p11  ;;  %s1002_s1 = sshll.u32 %s1107_s10, 4  ;;  %s1003_s1 = int_to_ptr.vmem [resolvable:$false] %s1002_s1 }
  0x47   : > { %s1004_s14 = scalar_lea.vmem %s1003_s1, 128  ;;  %p1005_p13 = scmp.lt.s32.totalorder %s252_s7, %s1003_s1 }
  0x48   : > { %p1001_p9 = pneg %p1000_p6  ;;  %p1006_p1 = scmp.lt.s32.totalorder %s1004_s14, %s997_s17 }
  0x4a   : > { %p1007_p4 = por %p1006_p1, %p1005_p13 }
  0x4c   : > { %p1008_p8 = pnand %p1007_p4, %p1001_p9 }
  0x4e   : > { %1011 = shalt.err (!%p1008_p8)
}
  0x4f   : > { %820 = dma.hbm_to_vmem [thread:$0]  (!%p1260_p2), %s249_s27, 64, %s252_s7, %s240_s11  }
  0x50   : > { %p1366_p12 = scmp.ne.s32.totalorder %s1361_s30, 0 }
  0x51   : > { %s1271_s16 = sand.u32 (!%p1366_p12), 1, %s1084_s19   ;;  %p1367_p5 = scmp.ne.s32.totalorder (!%p1366_p12), %s1359_s28, 0 }
  0x52   : > { %260 = sbr.rel (%p1366_p12) target bundleno = 705 (0x2c1), region = 40  ;;  %s704_s12 = sshll.u32 (!%p1366_p12), %s1271_s16, 2 }
  0x53   : > { %s263_s24 = scalar_lea.sflag (!%p1366_p12), [#allocation4], %s1271_s16  ;;  %s1275_s25 = scalar_lea.vmem (!%p1366_p12), [#allocation3], %s704_s12 }
  0x57   : > { %1063 = dma.done.wait (%p1367_p5), %s263_s24, 64  }
  0x58   : > { %1065 = vsyncadd (%p1367_p5), %s263_s24, 4294967232  ;;  %p1368_p3 = scmp.ne.s32.totalorder %s1357_s26, 0 }
  0x5a   : > { %1067 = dma.done.wait (%p1368_p3), [#allocation7], 1088  }
  0x5b   : > { %1069 = vsyncadd (%p1368_p3), [#allocation7], 4294966208 }
  0x5c   : > { %1071 = dma.done.wait (%p1368_p3), [#allocation10], 1024  }
  0x5d   : > { %1073 = vsyncadd (%p1368_p3), [#allocation10], 4294966272  ;;  %v1108_v0 = vmov 0.0   ;;  %vm1109_vm0 = vmmov 0   ;;  %v888_v1 = vld [vmem:[#allocation6 + $0x38] sm:$0xff]   ;;  %v889_v2 = vld [vmem:[#allocation6 + $0x30] sm:$0xff]  }
  0x5e   : > { %751 = vmatprep.subr.bf16.mxu0 %v1108_v0  ;;  %767 = vmatprep.mubr.msk.bf16.mxu0 %vm1109_vm0, %v1108_v0  ;;  %v890_v3 = vld [vmem:[#allocation6 + $0x28] sm:$0xff]   ;;  %v891_v4 = vld [vmem:[#allocation6 + $0x20] sm:$0xff]   ;;  %v892_v5 = vld [vmem:[#allocation6 + $0x18] sm:$0xff]   ;;  %s708_s1 = sshll.u32 %s1271_s16, 3  ;;  %s730_s30 = sshll.u32 %s1092_s21, 7 }
  0x5f   : > { %771 = vmatprep.subr.bf16.mxu1 %v1108_v0  ;;  %787 = vmatprep.mubr.msk.bf16.mxu1 %vm1109_vm0, %v1108_v0  ;;  %v893_v6 = vld [vmem:[#allocation6 + $0x10] sm:$0xff]   ;;  %v894_v7 = vld [vmem:[#allocation6 + $0x8] sm:$0xff]   ;;  %v895_v8 = vld [vmem:[#allocation6] sm:$0xff]   ;;  %s304_s27 = scalar_lea.vmem [#allocation11], %s708_s1  ;;  %s1298_s11 = scalar_lea.hbm %s1351_s5, %s730_s30 }
  0x60   : > { %752 = vmatpush3.bf16.msra.mxu0 %v888_v1  ;;  %v313_v9 = vld [vmem:[%s1275_s25] sm:$0xf]  ;;  %v717_v10 = vld [vmem:[#allocation8] ss:$0 sm:$0xff]  ;;  %v898_v20 = vld [vmem:[#allocation9 + $0x28] sm:$0xff]   ;;  %s584_s6 = sshll.u32 %s304_s27, 4  ;;  %s1300_s6 = int_to_ptr.vmem [resolvable:$true] %s584_s6 }
  0x61   : > { %753 = vmatprep.subr.bf16.mxu0 %v1108_v0  ;;  %v896_v18 = vld [vmem:[#allocation9 + $0x38] sm:$0xff]   ;;  %v897_v19 = vld [vmem:[#allocation9 + $0x30] sm:$0xff]   ;;  %v899_v21 = vld [vmem:[#allocation9 + $0x20] sm:$0xff]   ;;  %s571_s17 = scalar_lea.sflag [#allocation5], %s1271_s16  ;;  %s1012_s10 = scalar_lea.vmem %s1300_s6, 128 }
  0x62   : > { %772 = vmatpush3.bf16.msra.mxu1 %v896_v18  ;;  %v900_v22 = vld [vmem:[#allocation9 + $0x18] sm:$0xff]   ;;  %v901_v23 = vld [vmem:[#allocation9 + $0x10] sm:$0xff]   ;;  %v902_v24 = vld [vmem:[#allocation9 + $0x8] sm:$0xff]   ;;  %p1013_p10 = scmp.ne.s32.totalorder %s1300_s6, %s1012_s10  ;;  %s1110_s21 = smov [#allocation11]  }
  0x63   : > { %773 = vmatprep.subr.bf16.mxu1 %v1108_v0  ;;  %v903_v25 = vld [vmem:[#allocation9] sm:$0xff]   ;;  %v718_v36 = vld [vmem:[#allocation8 + $0x1] ss:$0 sm:$0xff]  ;;  %v719_v38 = vld [vmem:[#allocation8 + $0x2] ss:$0 sm:$0xff]  ;;  %s1016_s14 = sshll.u32 %s1110_s21, 4  ;;  %s1017_s14 = int_to_ptr.vmem [resolvable:$false] %s1016_s14 }
  0x64   : > { %754 = vmatpush3.bf16.msra.mxu0 %v889_v2  ;;  %v720_v42 = vld [vmem:[%s1350_s4] ss:$0 sm:$0xff]  ;;  %p1014_p2 = pnand %p1013_p10, %p1241_p0  ;;  %s1018_s12 = scalar_lea.vmem %s1017_s14, 256 }
  0x65   : > { %755 = vmatprep.subr.bf16.mxu0 %v1108_v0  ;;  %p1019_p7 = scmp.lt.s32.totalorder %s1300_s6, %s1017_s14  ;;  %p1020_p6 = scmp.lt.s32.totalorder %s1018_s12, %s1012_s10 }
  0x66   : > { %774 = vmatpush3.bf16.msra.mxu1 %v897_v19  ;;  %p1015_p11 = pneg %p1014_p2 }
  0x67   : > { %775 = vmatprep.subr.bf16.mxu1 %v1108_v0  ;;  %p1021_p9 = por %p1020_p6, %p1019_p7 }
  0x68   : > { %756 = vmatpush3.bf16.msra.mxu0 %v890_v3 }
  0x69   : > { %757 = vmatprep.subr.bf16.mxu0 %v1108_v0  ;;  %p1022_p13 = pnand %p1021_p9, %p1015_p11 }
  0x6a   : > { %776 = vmatpush3.bf16.msra.mxu1 %v898_v20 }
  0x6b   : > { %777 = vmatprep.subr.bf16.mxu1 %v1108_v0 }
  0x6c   : > { %758 = vmatpush3.bf16.msra.mxu0 %v891_v4 }
  0x6d   : > { %759 = vmatprep.subr.bf16.mxu0 %v1108_v0 }
  0x6e   : > { %778 = vmatpush3.bf16.msra.mxu1 %v899_v21 }
  0x6f   : > { %779 = vmatprep.subr.bf16.mxu1 %v1108_v0 }
  0x70   : > { %760 = vmatpush3.bf16.msra.mxu0 %v892_v5 }
  0x71   : > { %761 = vmatprep.subr.bf16.mxu0 %v1108_v0 }
  0x72   : > { %780 = vmatpush3.bf16.msra.mxu1 %v900_v22 }
  0x73   : > { %781 = vmatprep.subr.bf16.mxu1 %v1108_v0 }
  0x74   : > { %762 = vmatpush3.bf16.msra.mxu0 %v893_v6 }
  0x75   : > { %763 = vmatprep.subr.bf16.mxu0 %v1108_v0 }
  0x76   : > { %782 = vmatpush3.bf16.msra.mxu1 %v901_v23 }
  0x77   : > { %783 = vmatprep.subr.bf16.mxu1 %v1108_v0 }
  0x78   : > { %764 = vmatpush3.bf16.msra.mxu0 %v894_v7 }
  0x79   : > { %765 = vmatprep.subr.bf16.mxu0 %v1108_v0 }
  0x7a   : > { %784 = vmatpush3.bf16.msra.mxu1 %v902_v24 }
  0x7b   : > { %785 = vmatprep.subr.bf16.mxu1 %v1108_v0 }
  0x7c   : > { %766 = vmatpush3.bf16.msra.mxu0 %v895_v8 }
  0x7e   : > { %786 = vmatpush3.bf16.msra.mxu1 %v903_v25 }
  0x7f   : > { %768 = vmatmul.mubr.bf16.vlgmr.msra.gmra.mxu0 %v313_v9 }
 0x13f   : > { %v412_v11 = vpop.f32.mrf.mxu0 }
 0x140   : > { %v431_v12 = vadd.f32 %v717_v10, %v412_v11 }
 0x141   : > { %v769_v13 = vpop.f32.mrf.mxu0 }
 0x142   : > { %v432_v14 = vmax.f32 %v431_v12, 0.0 }
 0x143   : > { %v415_v15 = vpop.f32.mrf.mxu0 }
 0x144   : > { %433 = vadd.xlane.f32.xlu0 %v432_v14  ;;  %v436_v17 = vmul.f32 %v432_v14, %v432_v14 }
 0x145   : > { %v770_v16 = vpop.f32.mrf.mxu0 }
 0x148   : > { %437 = vadd.xlane.f32.xlu0 %v436_v17 }
 0x1cd   : > { %v434_v26 = vpop.xlane.xlu0 %433 }
 0x1ce   : > { %v435_v27 = vmul.f32 0.03125, %v434_v26 }
 0x1d0   : > { %v440_v29 = vmul.f32 %v435_v27, %v435_v27  ;;  %v443_v34 = vsub.f32 %v432_v14, %v435_v27 }
 0x1d1   : > { %v438_v28 = vpop.xlane.xlu0 %437 }
 0x1d2   : > { %v439_v30 = vmul.f32 0.03125, %v438_v28 }
 0x1d4   : > { %v441_v31 = vsub.f32 %v439_v30, %v440_v29 }
 0x1d6   : > { %v442_v32 = vmax.f32 %v441_v31, 0.0 }
 0x1d8   : > { %v444_v33 = vadd.f32 1e-05, %v442_v32 }
 0x1da   : > { %904 = vrsqrt.f32 %v444_v33 }
 0x1e7   : > { %v905_v35 = vpop.eup %904 }
 0x1e8   : > { %v446_v37 = vmul.f32 %v905_v35, %v443_v34 }
 0x1ea   : > { %v451_v39 = vmul.f32 %v718_v36, %v446_v37 }
 0x1ec   : > { %v456_v40 = vadd.f32 %v719_v38, %v451_v39 }
 0x1ee   : > { %v457_v41 = vpack.c.bf16 %v456_v40, %v456_v40 }
 0x1f0   : > { %788 = vmatmul.mubr.bf16.vlgmr.msra.gmra.mxu1 %v457_v41 }
 0x2b0   : > { %v563_v43 = vpop.f32.mrf.mxu1 }
 0x2b1   : > { %v564_v44 = vadd.f32 %v720_v42, %v563_v43 }
 0x2b2   : > { %v789_v45 = vpop.f32.mrf.mxu1 }
 0x2b3   : > { %569 = vst [vmem:[%s304_s27] sm:$0xff] %v564_v44 }
 0x2b4   : > { %v566_v46 = vpop.f32.mrf.mxu1 }
 0x2b5   : > { %1025 = shalt.err (!%p1022_p13)
}
 0x2b6   : > { %s1026_s24 = scalar_lea.hbm %s1298_s11, 128  ;;  %s1030_s1 = scalar_lea.hbm %s1351_s5, 256 }
 0x2b7   : > { %p1027_p1 = scmp.ne.s32.totalorder %s1298_s11, %s1026_s24  ;;  %p1031_p12 = scmp.lt.s32.totalorder %s1298_s11, %s1351_s5 }
 0x2b8   : > { %p1032_p5 = scmp.lt.s32.totalorder %s1030_s1, %s1026_s24 }
 0x2b9   : > { %p1028_p4 = pnand %p1027_p1, %p1241_p0 }
 0x2ba   : > { %p1033_p3 = por %p1032_p5, %p1031_p12 }
 0x2bb   : > { %p1029_p8 = pneg %p1028_p4 }
 0x2bd   : > { %p1034_p10 = pnand %p1033_p3, %p1029_p8 }
 0x2bf   : > { %1037 = shalt.err (!%p1034_p10)
}
 0x2c0   : > { %805 = dma.vmem_to_hbm [thread:$0]  (%p1241_p0), %s1300_s6, 128, %s1298_s11, %s571_s17   ;;  %v790_v47 = vpop.f32.mrf.mxu1 }
 0x2c1 PF: > { %s596_s30 = sand.u32 1, %s1080_s18   ;;  %p1369_p2 = scmp.ne.s32.totalorder %s1360_s29, 0 }
 0x2c2   : > { %p1370_p11 = scmp.ge.s32.totalorder %s1100_s23, 2  ;;  %s597_s27 = scalar_lea.sflag [#allocation5], %s596_s30 }
 0x2c4   : > { %p822_p7 = pnand %p1370_p11, %p1369_p2 }
 0x2c6   : > { %p823_p6 = pneg %p822_p7 }
 0x2c8   : > { %1075 = dma.done.wait (%p823_p6), %s597_s27, 128  }
 0x2c9   : > { %1077 = vsyncadd (%p823_p6), %s597_s27, 4294967168  ;;  %s23_s23 = sadd.s32 1, %s1100_s23   ;;  %s1371_s18 = smov %s1084_s19 }
 0x2ca   : > { %p20_p9 = scmp.ge.s32.totalorder %s23_s23, 4   ;;  %s1372_s19 = smov %s1088_s20 }
 0x2cb   : > { %s1373_s20 = smov %s1253_s15  ;;  %s1374_s21 = smov %s1096_s22 }
 0x2cc   : > { %s1375_s22 = smov %s1377_s13  ;;  %22 = sbr.rel (!%p20_p9) target bundleno = 10 (0xa), region = 106 }
 0x2d1   :  { %602 = vsyncpa [#allocation4], 1 }
 0x2d2   :  { %604 = vsyncpa [#allocation4 + $0x1], 1 }
 0x2d3   :  { %605 = vsyncpa [#allocation7], 1 }
 0x2d4   :  { %606 = vsyncpa [#allocation10], 1 }
 0x2d5   :  { %607 = vsyncpa [#allocation5], 1 }
 0x2d6   :  { %609 = vsyncpa [#allocation5 + $0x1], 1 }

</bundles_post_ra>
